<compile_context>
chip_gen: v6e
topology: v6e:2x2x1
jax: 0.10.0
libtpu: 0.0.40
codegen_flags: <defaults>
</compile_context>

<pallas_src>
import jax
import jax.numpy as jnp
from jax.experimental import pallas as pl
from jax.experimental.pallas import tpu as pltpu


_LANES = 1024  # lane-dense last dim: large multiple of 128


def _mul_kernel(a_ref, b_ref, o_ref):
    # Pure VPU elementwise multiply over the whole VMEM tile.
    o_ref[...] = a_ref[...] * b_ref[...]


def _pick_tile_rows(rows: int, itemsize: int) -> int:
    # Keep 3 arrays x 2 pipeline buffers x tile_bytes well under the smallest
    # default scoped-VMEM limit (v5e: 16 MiB): cap each tile at ~2 MiB.
    budget_bytes = 2 * 1024 * 1024
    max_rows = max(8, budget_bytes // (_LANES * itemsize))
    max_rows = min(512, (max_rows // 8) * 8)  # >=512 lanes already; 512 rows is plenty
    # Don't allocate more rows than the (sublane-rounded) problem needs.
    needed_rows = ((rows + 7) // 8) * 8
    return max(8, min(max_rows, needed_rows))


def pallas_mul(a: jax.Array, b: jax.Array) -> jax.Array:
    # Scoped contract: same-shape, same-dtype elementwise multiply
    # (PyTorch `*` broadcasting / dtype promotion intentionally not supported).
    assert a.shape == b.shape, "pallas_mul requires identical shapes"
    assert a.dtype == b.dtype, "pallas_mul requires identical dtypes"

    orig_shape = a.shape
    n = a.size
    if n == 0:
        return a * b

    itemsize = jnp.dtype(a.dtype).itemsize
    rows = pl.cdiv(n, _LANES)
    tile_rows = _pick_tile_rows(rows, itemsize)
    padded_rows = pl.cdiv(rows, tile_rows) * tile_rows
    padded_n = padded_rows * _LANES

    # Flatten + zero-pad to an exactly tileable lane-dense slab.
    af = jnp.pad(a.reshape(-1), (0, padded_n - n)).reshape(padded_rows, _LANES)
    bf = jnp.pad(b.reshape(-1), (0, padded_n - n)).reshape(padded_rows, _LANES)

    grid = (padded_rows // tile_rows,)
    spec = pl.BlockSpec((tile_rows, _LANES), lambda i: (i, 0))

    out = pl.pallas_call(
        _mul_kernel,
        out_shape=jax.ShapeDtypeStruct((padded_rows, _LANES), a.dtype),
        grid=grid,
        in_specs=[spec, spec],
        out_specs=spec,
        compiler_params=pltpu.CompilerParams(
            # Single independent axis -> shards across both TCs on v7x.
            dimension_semantics=("parallel",),
        ),
    )(af, bf)

    return out.reshape(-1)[:n].reshape(orig_shape)


if __name__ == "__main__":
    key = jax.random.PRNGKey(0)

    def check(shape, k):
        k1, k2 = jax.random.split(k)
        x = jax.random.normal(k1, shape, dtype=jnp.float32)
        y = jax.random.normal(k2, shape, dtype=jnp.float32)
        out = jax.block_until_ready(pallas_mul(x, y))
        expected = x * y
        assert out.shape == expected.shape and out.dtype == expected.dtype
        assert jnp.allclose(out, expected, atol=1e-6, rtol=1e-6), shape

    k1, k2, k3 = jax.random.split(key, 3)
    # Matches MulModule.get_example_inputs(): two (3, 2) float32 tensors.
    check((3, 2), k1)
    # Larger lane-dense case: exercises a multi-step tiled grid (grid=(2,)).
    check((1024, 1024), k2)
    # Odd, non-aligned case: exercises the pad + un-pad path.
    check((257, 130), k3)

    print("KERNEL_OK")
</pallas_src>

<mosaic_0001>
module attributes {stable_mosaic.version = 11 : i64} {
  func.func @_mul_kernel(%arg0: i32, %arg1: memref<8x1024xf32, #tpu.memory_space<vmem>>, %arg2: memref<8x1024xf32, #tpu.memory_space<vmem>>, %arg3: memref<8x1024xf32, #tpu.memory_space<vmem>>) attributes {dimension_semantics = [#tpu.dimension_semantics<parallel>], iteration_bounds = array<i64: 1>, scalar_prefetch = 0 : i64, scratch_operands = 0 : i64, tpu.core_type = #tpu.core_type<tc>, window_params = [{transform_indices = @transform_0, window_bounds = array<i64: 8, 1024>}, {transform_indices = @transform_1, window_bounds = array<i64: 8, 1024>}, {transform_indices = @transform_2, window_bounds = array<i64: 8, 1024>}]} {
    %c0 = arith.constant 0 : index
    %c0_0 = arith.constant 0 : index
    %0 = vector.load %arg1[%c0, %c0_0] : memref<8x1024xf32, #tpu.memory_space<vmem>>, vector<8x1024xf32>
    %c0_1 = arith.constant 0 : index
    %c0_2 = arith.constant 0 : index
    %1 = vector.load %arg2[%c0_1, %c0_2] : memref<8x1024xf32, #tpu.memory_space<vmem>>, vector<8x1024xf32>
    %2 = arith.mulf %0, %1 : vector<8x1024xf32>
    %c0_3 = arith.constant 0 : index
    %c0_4 = arith.constant 0 : index
    %3 = vector.load %arg3[%c0_3, %c0_4] : memref<8x1024xf32, #tpu.memory_space<vmem>>, vector<8x1024xf32>
    tpu.vector_store %arg3[%c0_3, %c0_4], %2 {strides = array<i32>} : memref<8x1024xf32, #tpu.memory_space<vmem>>, vector<8x1024xf32>,
    return
  }
  func.func @transform_0(%arg0: i32) -> (i32, i32) {
    %c0_i32 = arith.constant 0 : i32
    %c0_i32_0 = arith.constant 0 : i32
    return %arg0, %c0_i32 : i32, i32
  }
  func.func @transform_1(%arg0: i32) -> (i32, i32) {
    %c0_i32 = arith.constant 0 : i32
    %c0_i32_0 = arith.constant 0 : i32
    return %arg0, %c0_i32 : i32, i32
  }
  func.func @transform_2(%arg0: i32) -> (i32, i32) {
    %c0_i32 = arith.constant 0 : i32
    %c0_i32_0 = arith.constant 0 : i32
    return %arg0, %c0_i32 : i32, i32
  }
}

</mosaic_0001>

<bundles_post_ra>
// kernel: tpu_custom_call.1
= control target key start
LH: loop header
LB: loop body
LE: loop exit
PB: predicated region body
PF: predicated region fallthrough
CT: control target
= control target key end

     0   :  { %7 = vsyncpa [#allocation3], 0  ;;  %s180_s0 = inlined_call_operand.hbm [shape: f32[8,1024], index: 0, kind: input, shape index: {}]   ;;  %s181_s1 = inlined_call_operand.hbm [shape: f32[8,1024], index: 1, kind: input, shape index: {}]   ;;  %s182_s2 = inlined_call_operand.hbm [shape: f32[8,1024], index: 2, kind: output, shape index: {}]  }
   0x1   :  { %8 = vsyncpa [#allocation6], 0 }
   0x2   :  { %9 = vsyncpa [#allocation4], 0  ;;  %s153_s9 = smov [#allocation2]   ;;  %s154_s11 = smov [#allocation5]  }
   0x3   :  { %s16_s10 = sshll.u32 %s153_s9, 4  ;;  %s26_s12 = sshll.u32 %s154_s11, 4  ;;  %s17_s10 = int_to_ptr.vmem [resolvable:$true] %s16_s10  ;;  %s27_s12 = int_to_ptr.vmem [resolvable:$true] %s26_s12 }
   0x4   :  { %s95_s13 = scalar_lea.vmem %s17_s10, 1024  ;;  %p100_p1 = scmp.lt.s32.totalorder %s17_s10, %s17_s10 }
   0x5   :  { %p96_p0 = scmp.ne.s32.totalorder %s17_s10, %s95_s13  ;;  %p101_p2 = scmp.lt.s32.totalorder %s95_s13, %s95_s13 }
   0x7   :  { %p102_p3 = por %p101_p2, %p100_p1 }
   0x9   :  { %p103_p4 = pnand %p102_p3, %p96_p0 }
   0xb   :  { %106 = shalt.err (!%p103_p4)
}
   0xc   :  { %19 = dma.hbm_to_vmem [thread:$0]  %s180_s0, 1024, %s17_s10, [#allocation3]  }
   0xd   :  { %s115_s16 = scalar_lea.vmem %s27_s12, 1024  ;;  %p120_p6 = scmp.lt.s32.totalorder %s27_s12, %s27_s12 }
   0xe   :  { %p116_p5 = scmp.ne.s32.totalorder %s27_s12, %s115_s16  ;;  %p121_p7 = scmp.lt.s32.totalorder %s115_s16, %s115_s16 }
  0x10   :  { %p122_p8 = por %p121_p7, %p120_p6 }
  0x12   :  { %p123_p9 = pnand %p122_p8, %p116_p5 }
  0x14   :  { %126 = shalt.err (!%p123_p9)
}
  0x15   :  { %29 = dma.hbm_to_vmem [thread:$0]  %s181_s1, 1024, %s27_s12, [#allocation6]  }
  0x16   :  { %147 = dma.done.wait [#allocation3], 1024  }
  0x17   :  { %148 = vsyncadd [#allocation3], 4294966272 }
  0x18   :  { %149 = dma.done.wait [#allocation6], 1024  }
  0x19   :  { %150 = vsyncadd [#allocation6], 4294966272  ;;  %v36_v0 = vld [vmem:[#allocation2] sm:$0xff]  ;;  %v37_v2 = vld [vmem:[#allocation2 + $0x8] sm:$0xff]  ;;  %s155_s0 = smov [#allocation7]  }
  0x1a   :  { %v44_v1 = vld [vmem:[#allocation5] sm:$0xff]  ;;  %v45_v4 = vld [vmem:[#allocation5 + $0x8] sm:$0xff]  ;;  %v38_v5 = vld [vmem:[#allocation2 + $0x10] sm:$0xff]  ;;  %s74_s1 = sshll.u32 %s155_s0, 4  ;;  %s75_s1 = int_to_ptr.vmem [resolvable:$true] %s74_s1 }
  0x1b   :  { %v52_v3 = vmul.f32 %v44_v1, %v36_v0  ;;  %v46_v6 = vld [vmem:[#allocation5 + $0x10] sm:$0xff]  ;;  %v53_v7 = vmul.f32 %v45_v4, %v37_v2  ;;  %v39_v9 = vld [vmem:[#allocation2 + $0x18] sm:$0xff]  ;;  %v40_v11 = vld [vmem:[#allocation2 + $0x20] sm:$0xff]  ;;  %s127_s19 = scalar_lea.vmem %s75_s1, 1024  ;;  %p132_p11 = scmp.lt.s32.totalorder %s75_s1, %s75_s1 }
  0x1c   :  { %v54_v8 = vmul.f32 %v46_v6, %v38_v5  ;;  %v47_v10 = vld [vmem:[#allocation5 + $0x18] sm:$0xff]  ;;  %v48_v13 = vld [vmem:[#allocation5 + $0x20] sm:$0xff]  ;;  %v41_v14 = vld [vmem:[#allocation2 + $0x28] sm:$0xff]  ;;  %p128_p10 = scmp.ne.s32.totalorder %s75_s1, %s127_s19  ;;  %p133_p12 = scmp.lt.s32.totalorder %s127_s19, %s127_s19 }
  0x1d   :  { %60 = vst [vmem:[#allocation7] sm:$0xff] %v52_v3  ;;  %v55_v12 = vmul.f32 %v47_v10, %v39_v9  ;;  %v49_v15 = vld [vmem:[#allocation5 + $0x28] sm:$0xff]  ;;  %61 = vst [vmem:[#allocation7 + $0x8] sm:$0xff] %v53_v7  ;;  %v56_v16 = vmul.f32 %v48_v13, %v40_v11  ;;  %v42_v18 = vld [vmem:[#allocation2 + $0x30] sm:$0xff] }
  0x1e   :  { %62 = vst [vmem:[#allocation7 + $0x10] sm:$0xff] %v54_v8  ;;  %v57_v17 = vmul.f32 %v49_v15, %v41_v14  ;;  %v50_v19 = vld [vmem:[#allocation5 + $0x30] sm:$0xff]  ;;  %v43_v20 = vld [vmem:[#allocation2 + $0x38] sm:$0xff]  ;;  %p134_p13 = por %p133_p12, %p132_p11 }
  0x1f   :  { %63 = vst [vmem:[#allocation7 + $0x18] sm:$0xff] %v55_v12  ;;  %v58_v21 = vmul.f32 %v50_v19, %v42_v18  ;;  %v51_v22 = vld [vmem:[#allocation5 + $0x38] sm:$0xff]  ;;  %64 = vst [vmem:[#allocation7 + $0x20] sm:$0xff] %v56_v16 }
  0x20   :  { %65 = vst [vmem:[#allocation7 + $0x28] sm:$0xff] %v57_v17  ;;  %v59_v23 = vmul.f32 %v51_v22, %v43_v20  ;;  %p135_p0 = pnand %p134_p13, %p128_p10 }
  0x21   :  { %66 = vst [vmem:[#allocation7 + $0x30] sm:$0xff] %v58_v21 }
  0x22   :  { %67 = vst [vmem:[#allocation7 + $0x38] sm:$0xff] %v59_v23 }
  0x23   :  { %138 = shalt.err (!%p135_p0)
}
  0x24   :  { %77 = dma.vmem_to_hbm [thread:$0]  %s75_s1, 1024, %s182_s2, [#allocation4]  }
  0x25   :  { %151 = dma.done.wait [#allocation4], 1024  }
  0x26   :  { %152 = vsyncadd [#allocation4], 4294966272 }
  0x27   :  { %81 = vsyncpa [#allocation3], 1 }
  0x28   :  { %82 = vsyncpa [#allocation6], 1 }
  0x29   :  { %83 = vsyncpa [#allocation4], 1 }

</bundles_post_ra>
